<compile_context>
chip_gen: v5e
topology: v5e:2x2
jax: 0.10.0
libtpu: 0.0.40
codegen_flags: <defaults>
</compile_context>

<pallas_src>
import functools

import jax
import jax.numpy as jnp
from jax import lax
from jax.experimental import pallas as pl
from jax.experimental.pallas import tpu as pltpu

GAMMA = 1.5
ALPHA = 0.25
LANES = 128
SUB_ROWS = 32           # rows per inner-loop slice == accumulator sublanes (4 vregs)
MAX_BLOCK_ROWS = 4096   # 4096*128*4B = 2 MiB per input block (8 MiB double-buffered)
NUM_CORES = 2           # leading parallel axis; sharded across v7x's 2 TensorCores


def _loss_tile(x, y, *, gamma, alpha):
    """Elementwise focal loss on one (SUB_ROWS, LANES) f32 tile."""
    e = jnp.exp(-jnp.abs(x))                       # EUP; shared by BCE and sigmoid
    one_plus_e = 1.0 + e
    # log1p(e): 2-term series when e is tiny (1+e would round to 1), log otherwise.
    log_term = jnp.where(e < 1e-2, e * (1.0 - 0.5 * e), jnp.log(one_plus_e))
    # Numerically-stable BCE-with-logits (reduction='none'):
    #   bce = max(x, 0) - x*y + log1p(exp(-|x|))
    bce = jnp.maximum(x, 0.0) - x * y + log_term
    # sigmoid(x) from the shared exponential; approx reciprocal + one NR step.
    inv = pl.reciprocal(one_plus_e, approx=True)
    inv = inv * (2.0 - one_plus_e * inv)
    p = jnp.where(x >= 0.0, 1.0, e) * inv
    # q = 1 - p_t, strength-reduced; alpha factor folded to a single affine form.
    q = p + y * (1.0 - 2.0 * p)
    af = (1.0 - alpha) + y * (2.0 * alpha - 1.0)
    if gamma == 1.5:
        mf = q * jnp.sqrt(q)                       # q**1.5 with a single EUP op
    elif gamma == 2.0:
        mf = q * q
    elif gamma == 1.0:
        mf = q
    else:
        mf = q ** gamma
    return bce * (af * mf)


def _focal_loss_kernel(pred_ref, true_ref, out_ref, *, gamma, alpha, row_tile,
                       steps_per_core, n_valid):
    c = pl.program_id(0)                 # core / parallel axis
    i = pl.program_id(1)                 # sequential accumulation axis
    b = c * steps_per_core + i           # logical row-block index

    @pl.when(i == 0)
    def _():
        out_ref[...] = jnp.zeros_like(out_ref)

    num_slices = row_tile // SUB_ROWS
    block_elems = row_tile * LANES
    loss_fn = functools.partial(_loss_tile, gamma=gamma, alpha=alpha)
    zero_acc = jnp.zeros((SUB_ROWS, LANES), jnp.float32)

    def load(s):
        r0 = pl.multiple_of(s * SUB_ROWS, SUB_ROWS)
        x = pred_ref[pl.ds(r0, SUB_ROWS), :].astype(jnp.float32)
        y = true_ref[pl.ds(r0, SUB_ROWS), :].astype(jnp.float32)
        return x, y

    # Blocks fully inside the valid range take the unmasked fast path; only the
    # (at most one per core) block touching the ragged tail pays for masking.
    needs_mask = (b + 1) * block_elems > n_valid

    @pl.when(jnp.logical_not(needs_mask))
    def _():
        def body(s, acc):
            x, y = load(s)
            return acc + loss_fn(x, y)
        acc = lax.fori_loop(0, num_slices, body, zero_acc)
        out_ref[...] += acc[None, :, :]

    @pl.when(needs_mask)
    def _():
        # Element index within one (SUB_ROWS, LANES) slice, hoisted out of the loop.
        row_io = lax.broadcasted_iota(jnp.int32, (SUB_ROWS, LANES), 0)
        lane_io = lax.broadcasted_iota(jnp.int32, (SUB_ROWS, LANES), 1)
        local_idx = row_io * LANES + lane_io
        block_start = b * block_elems

        def body(s, acc):
            x, y = load(s)
            loss = loss_fn(x, y)
            thr = n_valid - (block_start + s * (SUB_ROWS * LANES))
            return acc + jnp.where(local_idx < thr, loss, 0.0)
        acc = lax.fori_loop(0, num_slices, body, zero_acc)
        out_ref[...] += acc[None, :, :]


def focal_loss(pred, true, gamma=GAMMA, alpha=ALPHA, reduction="mean"):
    """Focal loss over BCE-with-logits. pred/true: same shape (any rank/dtype)."""
    assert pred.shape == true.shape
    n = int(pred.size)

    pred_flat = pred.reshape(-1)
    true_flat = true.reshape(-1)

    # Pad only to a 128-lane multiple, and only when strictly necessary.
    rem = n % LANES
    if rem:
        pad = LANES - rem
        pred_flat = jnp.pad(pred_flat, (0, pad))
        true_flat = jnp.pad(true_flat, (0, pad))
    rows = (n + (LANES - rem if rem else 0)) // LANES

    row_tile = min(MAX_BLOCK_ROWS, ((rows + SUB_ROWS - 1) // SUB_ROWS) * SUB_ROWS)
    num_blocks = -(-rows // row_tile)
    steps_per_core = -(-num_blocks // NUM_CORES)

    pred2d = pred_flat.reshape(rows, LANES)
    true2d = true_flat.reshape(rows, LANES)

    def in_index(c, i):
        # Clamp so the (at most one) excess step on the second core re-reads a
        # valid block; the kernel's element mask zeroes its contribution.
        return (jnp.minimum(c * steps_per_core + i, num_blocks - 1), 0)

    kernel = functools.partial(
        _focal_loss_kernel,
        gamma=float(gamma), alpha=float(alpha),
        row_tile=int(row_tile), steps_per_core=int(steps_per_core),
        n_valid=n)

    bytes_accessed = (pred2d.size * pred2d.dtype.itemsize
                      + true2d.size * true2d.dtype.itemsize
                      + NUM_CORES * SUB_ROWS * LANES * 4)

    partial_sums = pl.pallas_call(
        kernel,
        out_shape=jax.ShapeDtypeStruct((NUM_CORES, SUB_ROWS, LANES), jnp.float32),
        grid_spec=pltpu.PrefetchScalarGridSpec(
            num_scalar_prefetch=0,
            grid=(NUM_CORES, steps_per_core),
            in_specs=[
                pl.BlockSpec((row_tile, LANES), in_index),
                pl.BlockSpec((row_tile, LANES), in_index),
            ],
            out_specs=pl.BlockSpec((1, SUB_ROWS, LANES), lambda c, i: (c, 0, 0)),
        ),
        compiler_params=pltpu.CompilerParams(
            dimension_semantics=("parallel", "arbitrary"),
            vmem_limit_bytes=32 * 1024 * 1024,
        ),
        cost_estimate=pl.CostEstimate(
            flops=30 * n, transcendentals=4 * n, bytes_accessed=bytes_accessed),
    )(pred2d, true2d)

    total = jnp.sum(partial_sums)
    if reduction == "mean":
        return total / n
    elif reduction == "sum":
        return total
    else:
        # TODO(synk): reduction='none' (full elementwise loss map) not implemented.
        raise NotImplementedError("only 'mean' and 'sum' reductions are supported")


def _focal_loss_ref(pred, true, gamma=GAMMA, alpha=ALPHA):
    x = pred.astype(jnp.float32)
    y = true.astype(jnp.float32)
    bce = jnp.maximum(x, 0.0) - x * y + jnp.log1p(jnp.exp(-jnp.abs(x)))
    p = jax.nn.sigmoid(x)
    p_t = y * p + (1.0 - y) * (1.0 - p)
    af = y * alpha + (1.0 - y) * (1.0 - alpha)
    mf = (1.0 - p_t) ** gamma
    return jnp.mean(bce * af * mf)


if __name__ == "__main__":
    key = jax.random.PRNGKey(0)
    k1, k2, k3, k4 = jax.random.split(key, 4)

    # Small YOLO-like logits / targets: (batch=2, channels=4, H=16, W=16)
    pred = jax.random.normal(k1, (2, 4, 16, 16), dtype=jnp.float32) * 2.0
    true = (jax.random.uniform(k2, (2, 4, 16, 16)) > 0.7).astype(jnp.float32)

    out = jax.block_until_ready(focal_loss(pred, true))
    ref = _focal_loss_ref(pred, true)
    assert jnp.allclose(out, ref, rtol=5e-4, atol=1e-7), (out, ref)

    # Ragged shape (exercises the 128-pad + masked ragged last block).
    pred_r = jax.random.normal(k3, (2, 3, 5, 7), dtype=jnp.float32) * 2.0
    true_r = (jax.random.uniform(k4, (2, 3, 5, 7)) > 0.7).astype(jnp.float32)

    out_r = jax.block_until_ready(focal_loss(pred_r, true_r))
    ref_r = _focal_loss_ref(pred_r, true_r)
    assert jnp.allclose(out_r, ref_r, rtol=5e-4, atol=1e-7), (out_r, ref_r)

    print("KERNEL_OK")
</pallas_src>

<mosaic_0001>
module attributes {stable_mosaic.version = 11 : i64} {
  func.func @_focal_loss_kernel(%arg0: i32, %arg1: i32, %arg2: memref<32x128xf32, #tpu.memory_space<vmem>>, %arg3: memref<32x128xf32, #tpu.memory_space<vmem>>, %arg4: memref<1x32x128xf32, #tpu.memory_space<vmem>>) attributes {dimension_semantics = [#tpu.dimension_semantics<parallel>, #tpu.dimension_semantics<arbitrary>], iteration_bounds = array<i64: 2, 1>, scalar_prefetch = 0 : i64, scratch_operands = 0 : i64, tpu.core_type = #tpu.core_type<tc>, window_params = [{transform_indices = @transform_0, window_bounds = array<i64: 32, 128>}, {transform_indices = @transform_1, window_bounds = array<i64: 32, 128>}, {transform_indices = @transform_2, window_bounds = array<i64: 1, 32, 128>}]} {
    %c1_i32 = arith.constant 1 : i32
    %0 = arith.muli %arg0, %c1_i32 : i32
    %1 = arith.addi %0, %arg1 : i32
    %c0_i32 = arith.constant 0 : i32
    %2 = arith.cmpi eq, %arg1, %c0_i32 : i32
    %3 = arith.extui %2 : i1 to i32
    %c0_i32_0 = arith.constant 0 : i32
    %4 = arith.cmpi ne, %3, %c0_i32_0 : i32
    scf.if %4 {
      %cst_4 = arith.constant 0.000000e+00 : f32
      %14 = vector.broadcast %cst_4 : f32 to vector<1x32x128xf32>
      %c0 = arith.constant 0 : index
      %c0_5 = arith.constant 0 : index
      %c0_6 = arith.constant 0 : index
      %15 = vector.load %arg4[%c0, %c0_5, %c0_6] : memref<1x32x128xf32, #tpu.memory_space<vmem>>, vector<1x32x128xf32>
      tpu.vector_store %arg4[%c0, %c0_5, %c0_6], %14 {strides = array<i32>} : memref<1x32x128xf32, #tpu.memory_space<vmem>>, vector<1x32x128xf32>,
    } else {
    }
    %cst = arith.constant 0.000000e+00 : f32
    %5 = vector.broadcast %cst : f32 to vector<32x128xf32>
    %c1_i32_1 = arith.constant 1 : i32
    %6 = arith.addi %1, %c1_i32_1 : i32
    %c4096_i32 = arith.constant 4096 : i32
    %7 = arith.muli %6, %c4096_i32 : i32
    %c2048_i32 = arith.constant 2048 : i32
    %8 = arith.cmpi sgt, %7, %c2048_i32 : i32
    %true = arith.constant true
    %9 = arith.xori %8, %true : i1
    %10 = arith.extui %9 : i1 to i32
    %c0_i32_2 = arith.constant 0 : i32
    %11 = arith.cmpi ne, %10, %c0_i32_2 : i32
    scf.if %11 {
      %c0_i32_4 = arith.constant 0 : i32
      %c32_i32 = arith.constant 32 : i32
      %14 = arith.muli %c0_i32_4, %c32_i32 : i32
      %15 = tpu.assume_multiple %14, 32 : i32
      %16 = arith.index_cast %15 : i32 to index
      %c0 = arith.constant 0 : index
      %17 = vector.load %arg2[%16, %c0] : memref<32x128xf32, #tpu.memory_space<vmem>>, vector<32x128xf32>
      %18 = arith.index_cast %15 : i32 to index
      %c0_5 = arith.constant 0 : index
      %19 = vector.load %arg3[%18, %c0_5] : memref<32x128xf32, #tpu.memory_space<vmem>>, vector<32x128xf32>
      %20 = math.absf %17 : vector<32x128xf32>
      %cst_6 = arith.constant 0.000000e+00 : f32
      %21 = vector.broadcast %cst_6 : f32 to vector<32x128xf32>
      %22 = arith.subf %21, %20 : vector<32x128xf32>
      %23 = math.exp %22 : vector<32x128xf32>
      %cst_7 = arith.constant 1.000000e+00 : f32
      %24 = vector.broadcast %cst_7 : f32 to vector<32x128xf32>
      %25 = arith.addf %24, %23 : vector<32x128xf32>
      %cst_8 = arith.constant 0.00999999977 : f32
      %26 = vector.broadcast %cst_8 : f32 to vector<32x128xf32>
      %27 = arith.cmpf olt, %23, %26 : vector<32x128xf32>
      %cst_9 = arith.constant 5.000000e-01 : f32
      %28 = vector.broadcast %cst_9 : f32 to vector<32x128xf32>
      %29 = arith.mulf %28, %23 : vector<32x128xf32>
      %cst_10 = arith.constant 1.000000e+00 : f32
      %30 = vector.broadcast %cst_10 : f32 to vector<32x128xf32>
      %31 = arith.subf %30, %29 : vector<32x128xf32>
      %32 = arith.mulf %23, %31 : vector<32x128xf32>
      %33 = math.log %25 : vector<32x128xf32>
      %34 = arith.select %27, %32, %33 : vector<32x128xi1>, vector<32x128xf32>
      %cst_11 = arith.constant 0.000000e+00 : f32
      %35 = vector.broadcast %cst_11 : f32 to vector<32x128xf32>
      %36 = arith.maximumf %17, %35 : vector<32x128xf32>
      %37 = arith.mulf %17, %19 : vector<32x128xf32>
      %38 = arith.subf %36, %37 : vector<32x128xf32>
      %39 = arith.addf %38, %34 : vector<32x128xf32>
      %40 = tpu.reciprocal %25 {approx = true} : vector<32x128xf32> -> vector<32x128xf32>
      %41 = arith.mulf %25, %40 : vector<32x128xf32>
      %cst_12 = arith.constant 2.000000e+00 : f32
      %42 = vector.broadcast %cst_12 : f32 to vector<32x128xf32>
      %43 = arith.subf %42, %41 : vector<32x128xf32>
      %44 = arith.mulf %40, %43 : vector<32x128xf32>
      %cst_13 = arith.constant 0.000000e+00 : f32
      %45 = vector.broadcast %cst_13 : f32 to vector<32x128xf32>
      %46 = arith.cmpf oge, %17, %45 : vector<32x128xf32>
      %cst_14 = arith.constant 1.000000e+00 : f32
      %47 = vector.broadcast %cst_14 : f32 to vector<32x128xf32>
      %48 = arith.select %46, %47, %23 : vector<32x128xi1>, vector<32x128xf32>
      %49 = arith.mulf %48, %44 : vector<32x128xf32>
      %cst_15 = arith.constant 2.000000e+00 : f32
      %50 = vector.broadcast %cst_15 : f32 to vector<32x128xf32>
      %51 = arith.mulf %50, %49 : vector<32x128xf32>
      %cst_16 = arith.constant 1.000000e+00 : f32
      %52 = vector.broadcast %cst_16 : f32 to vector<32x128xf32>
      %53 = arith.subf %52, %51 : vector<32x128xf32>
      %54 = arith.mulf %19, %53 : vector<32x128xf32>
      %55 = arith.addf %49, %54 : vector<32x128xf32>
      %cst_17 = arith.constant -5.000000e-01 : f32
      %56 = vector.broadcast %cst_17 : f32 to vector<32x128xf32>
      %57 = arith.mulf %19, %56 : vector<32x128xf32>
      %cst_18 = arith.constant 7.500000e-01 : f32
      %58 = vector.broadcast %cst_18 : f32 to vector<32x128xf32>
      %59 = arith.addf %58, %57 : vector<32x128xf32>
      %60 = math.sqrt %55 : vector<32x128xf32>
      %61 = arith.mulf %55, %60 : vector<32x128xf32>
      %62 = arith.mulf %59, %61 : vector<32x128xf32>
      %63 = arith.mulf %39, %62 : vector<32x128xf32>
      %64 = arith.addf %5, %63 : vector<32x128xf32>
      %c1_i32_19 = arith.constant 1 : i32
      %c0_20 = arith.constant 0 : index
      %c0_21 = arith.constant 0 : index
      %c0_22 = arith.constant 0 : index
      %65 = vector.load %arg4[%c0_20, %c0_21, %c0_22] : memref<1x32x128xf32, #tpu.memory_space<vmem>>, vector<1x32x128xf32>
      %66 = vector.shape_cast %64 : vector<32x128xf32> to vector<1x32x128xf32>
      %67 = arith.addf %65, %66 : vector<1x32x128xf32>
      %c0_23 = arith.constant 0 : index
      %c0_24 = arith.constant 0 : index
      %c0_25 = arith.constant 0 : index
      %68 = vector.load %arg4[%c0_23, %c0_24, %c0_25] : memref<1x32x128xf32, #tpu.memory_space<vmem>>, vector<1x32x128xf32>
      tpu.vector_store %arg4[%c0_23, %c0_24, %c0_25], %67 {strides = array<i32>} : memref<1x32x128xf32, #tpu.memory_space<vmem>>, vector<1x32x128xf32>,
    } else {
    }
    %12 = arith.extui %8 : i1 to i32
    %c0_i32_3 = arith.constant 0 : i32
    %13 = arith.cmpi ne, %12, %c0_i32_3 : i32
    scf.if %13 {
      %14 = tpu.iota {dimensions = array<i32: 0>} : vector<32x128xi32>
      %15 = tpu.iota {dimensions = array<i32: 1>} : vector<32x128xi32>
      %c128_i32 = arith.constant 128 : i32
      %16 = vector.broadcast %c128_i32 : i32 to vector<32x128xi32>
      %17 = arith.muli %14, %16 : vector<32x128xi32>
      %18 = arith.addi %17, %15 : vector<32x128xi32>
      %c4096_i32_4 = arith.constant 4096 : i32
      %19 = arith.muli %1, %c4096_i32_4 : i32
      %c0_i32_5 = arith.constant 0 : i32
      %c32_i32 = arith.constant 32 : i32
      %20 = arith.muli %c0_i32_5, %c32_i32 : i32
      %21 = tpu.assume_multiple %20, 32 : i32
      %22 = arith.index_cast %21 : i32 to index
      %c0 = arith.constant 0 : index
      %23 = vector.load %arg2[%22, %c0] : memref<32x128xf32, #tpu.memory_space<vmem>>, vector<32x128xf32>
      %24 = arith.index_cast %21 : i32 to index
      %c0_6 = arith.constant 0 : index
      %25 = vector.load %arg3[%24, %c0_6] : memref<32x128xf32, #tpu.memory_space<vmem>>, vector<32x128xf32>
      %26 = math.absf %23 : vector<32x128xf32>
      %cst_7 = arith.constant 0.000000e+00 : f32
      %27 = vector.broadcast %cst_7 : f32 to vector<32x128xf32>
      %28 = arith.subf %27, %26 : vector<32x128xf32>
      %29 = math.exp %28 : vector<32x128xf32>
      %cst_8 = arith.constant 1.000000e+00 : f32
      %30 = vector.broadcast %cst_8 : f32 to vector<32x128xf32>
      %31 = arith.addf %30, %29 : vector<32x128xf32>
      %cst_9 = arith.constant 0.00999999977 : f32
      %32 = vector.broadcast %cst_9 : f32 to vector<32x128xf32>
      %33 = arith.cmpf olt, %29, %32 : vector<32x128xf32>
      %cst_10 = arith.constant 5.000000e-01 : f32
      %34 = vector.broadcast %cst_10 : f32 to vector<32x128xf32>
      %35 = arith.mulf %34, %29 : vector<32x128xf32>
      %cst_11 = arith.constant 1.000000e+00 : f32
      %36 = vector.broadcast %cst_11 : f32 to vector<32x128xf32>
      %37 = arith.subf %36, %35 : vector<32x128xf32>
      %38 = arith.mulf %29, %37 : vector<32x128xf32>
      %39 = math.log %31 : vector<32x128xf32>
      %40 = arith.select %33, %38, %39 : vector<32x128xi1>, vector<32x128xf32>
      %cst_12 = arith.constant 0.000000e+00 : f32
      %41 = vector.broadcast %cst_12 : f32 to vector<32x128xf32>
      %42 = arith.maximumf %23, %41 : vector<32x128xf32>
      %43 = arith.mulf %23, %25 : vector<32x128xf32>
      %44 = arith.subf %42, %43 : vector<32x128xf32>
      %45 = arith.addf %44, %40 : vector<32x128xf32>
      %46 = tpu.reciprocal %31 {approx = true} : vector<32x128xf32> -> vector<32x128xf32>
      %47 = arith.mulf %31, %46 : vector<32x128xf32>
      %cst_13 = arith.constant 2.000000e+00 : f32
      %48 = vector.broadcast %cst_13 : f32 to vector<32x128xf32>
      %49 = arith.subf %48, %47 : vector<32x128xf32>
      %50 = arith.mulf %46, %49 : vector<32x128xf32>
      %cst_14 = arith.constant 0.000000e+00 : f32
      %51 = vector.broadcast %cst_14 : f32 to vector<32x128xf32>
      %52 = arith.cmpf oge, %23, %51 : vector<32x128xf32>
      %cst_15 = arith.constant 1.000000e+00 : f32
      %53 = vector.broadcast %cst_15 : f32 to vector<32x128xf32>
      %54 = arith.select %52, %53, %29 : vector<32x128xi1>, vector<32x128xf32>
      %55 = arith.mulf %54, %50 : vector<32x128xf32>
      %cst_16 = arith.constant 2.000000e+00 : f32
      %56 = vector.broadcast %cst_16 : f32 to vector<32x128xf32>
      %57 = arith.mulf %56, %55 : vector<32x128xf32>
      %cst_17 = arith.constant 1.000000e+00 : f32
      %58 = vector.broadcast %cst_17 : f32 to vector<32x128xf32>
      %59 = arith.subf %58, %57 : vector<32x128xf32>
      %60 = arith.mulf %25, %59 : vector<32x128xf32>
      %61 = arith.addf %55, %60 : vector<32x128xf32>
      %cst_18 = arith.constant -5.000000e-01 : f32
      %62 = vector.broadcast %cst_18 : f32 to vector<32x128xf32>
      %63 = arith.mulf %25, %62 : vector<32x128xf32>
      %cst_19 = arith.constant 7.500000e-01 : f32
      %64 = vector.broadcast %cst_19 : f32 to vector<32x128xf32>
      %65 = arith.addf %64, %63 : vector<32x128xf32>
      %66 = math.sqrt %61 : vector<32x128xf32>
      %67 = arith.mulf %61, %66 : vector<32x128xf32>
      %68 = arith.mulf %65, %67 : vector<32x128xf32>
      %69 = arith.mulf %45, %68 : vector<32x128xf32>
      %c4096_i32_20 = arith.constant 4096 : i32
      %70 = arith.muli %c0_i32_5, %c4096_i32_20 : i32
      %71 = arith.addi %19, %70 : i32
      %c2048_i32_21 = arith.constant 2048 : i32
      %72 = arith.subi %c2048_i32_21, %71 : i32
      %73 = vector.broadcast %72 : i32 to vector<32x128xi32>
      %74 = arith.cmpi slt, %18, %73 : vector<32x128xi32>
      %cst_22 = arith.constant 0.000000e+00 : f32
      %75 = vector.broadcast %cst_22 : f32 to vector<32x128xf32>
      %76 = arith.select %74, %69, %75 : vector<32x128xi1>, vector<32x128xf32>
      %77 = arith.addf %5, %76 : vector<32x128xf32>
      %c1_i32_23 = arith.constant 1 : i32
      %c0_24 = arith.constant 0 : index
      %c0_25 = arith.constant 0 : index
      %c0_26 = arith.constant 0 : index
      %78 = vector.load %arg4[%c0_24, %c0_25, %c0_26] : memref<1x32x128xf32, #tpu.memory_space<vmem>>, vector<1x32x128xf32>
      %79 = vector.shape_cast %77 : vector<32x128xf32> to vector<1x32x128xf32>
      %80 = arith.addf %78, %79 : vector<1x32x128xf32>
      %c0_27 = arith.constant 0 : index
      %c0_28 = arith.constant 0 : index
      %c0_29 = arith.constant 0 : index
      %81 = vector.load %arg4[%c0_27, %c0_28, %c0_29] : memref<1x32x128xf32, #tpu.memory_space<vmem>>, vector<1x32x128xf32>
      tpu.vector_store %arg4[%c0_27, %c0_28, %c0_29], %80 {strides = array<i32>} : memref<1x32x128xf32, #tpu.memory_space<vmem>>, vector<1x32x128xf32>,
    } else {
    }
    return
  }
  func.func @transform_0(%arg0: i32, %arg1: i32) -> (i32, i32) {
    %c1_i32 = arith.constant 1 : i32
    %0 = arith.muli %arg0, %c1_i32 : i32
    %1 = arith.addi %0, %arg1 : i32
    %c0_i32 = arith.constant 0 : i32
    %2 = arith.minsi %1, %c0_i32 : i32
    %c0_i32_0 = arith.constant 0 : i32
    %c0_i32_1 = arith.constant 0 : i32
    return %2, %c0_i32_0 : i32, i32
  }
  func.func @transform_1(%arg0: i32, %arg1: i32) -> (i32, i32) {
    %c1_i32 = arith.constant 1 : i32
    %0 = arith.muli %arg0, %c1_i32 : i32
    %1 = arith.addi %0, %arg1 : i32
    %c0_i32 = arith.constant 0 : i32
    %2 = arith.minsi %1, %c0_i32 : i32
    %c0_i32_0 = arith.constant 0 : i32
    %c0_i32_1 = arith.constant 0 : i32
    return %2, %c0_i32_0 : i32, i32
  }
  func.func @transform_2(%arg0: i32, %arg1: i32) -> (i32, i32, i32) {
    %c0_i32 = arith.constant 0 : i32
    %c0_i32_0 = arith.constant 0 : i32
    %c0_i32_1 = arith.constant 0 : i32
    return %arg0, %c0_i32, %c0_i32_0 : i32, i32, i32
  }
}

</mosaic_0001>

<bundles_post_ra>
// kernel: tpu_custom_call.1
= control target key start
LH: loop header
LB: loop body
LE: loop exit
PB: predicated region body
PF: predicated region fallthrough
CT: control target
= control target key end

     0   :  { %7 = vsyncpa [#allocation3], 0  ;;  %s1698_s0 = inlined_call_operand.hbm [shape: f32[16,128], index: 0, kind: input, shape index: {}]   ;;  %s1699_s1 = inlined_call_operand.hbm [shape: f32[16,128], index: 1, kind: input, shape index: {}]   ;;  %s1700_s2 = inlined_call_operand.hbm [shape: f32[2,32,128], index: 2, kind: output, shape index: {}]  }
   0x1   :  { %9 = vsyncpa [#allocation3 + $0x1], 0 }
   0x2   :  { %10 = vsyncpa [#allocation6], 0 }
   0x3   :  { %12 = vsyncpa [#allocation6 + $0x1], 0 }
   0x4   :  { %13 = vsyncpa [#allocation4], 0 }
   0x5   :  { %15 = vsyncpa [#allocation4 + $0x1], 0  ;;  %s1226_s9 = smov 0   ;;  %s1228_s10 = smov 0  }
   0x6   :  { %s1230_s11 = smov 0   ;;  %s1232_s12 = smov 0  }
   0x7   :  { %s1234_s13 = smov 0   ;;  %s1236_s14 = smov 0  }
   0x8   :  { %s1238_s15 = smov 0   ;;  %s1240_s16 = smov 0  }
   0x9 LB: > { %s823_s17 = sadd.s32 4294967295, %s1200_s16   ;;  %s824_s18 = sadd.s32 4294967294, %s1200_s16   ;;  %s1200_s16 = sphi %s1240_s16, %s21_s16   ;;  %s1196_s15 = sphi %s1238_s15, %s1710_s15   ;;  %s1192_s14 = sphi %s1236_s14, %s1709_s14   ;;  %s1188_s13 = sphi %s1234_s13, %s1688_s13   ;;  %s1184_s12 = sphi %s1232_s12, %s1708_s12   ;;  %s1180_s11 = sphi %s1230_s11, %s1707_s11   ;;  %s1176_s10 = sphi %s1228_s10, %s1706_s10   ;;  %s1172_s9 = sphi %s1226_s9, %s1705_s9  }
   0xa   : > { %s33_s19 = sadd.s32 1, %s1196_s15  ;;  %p1169_p1 = scmp.ne.s32.totalorder %s1188_s13, 0 }
   0xb   : > { %p35_p0 = scmp.ge.s32.totalorder %s33_s19, 2  ;;  %p54_p2 = scmp.eq.s32.totalorder %s1200_s16, 0 }
   0xc   : > { %p59_p3 = scmp.ne.s32.totalorder %s1188_s13, %s1184_s12  ;;  %p60_p5 = scmp.eq.s32.totalorder %s823_s17, 0 }
   0xd   : > { %s1712_s19 = smov (%p35_p0, %s33_s19), 0  ;;  %p1272_p4 = por %p1169_p1, %p54_p2 }
   0xe   : > { %p1276_p6 = por %p60_p5, %p59_p3  ;;  %s101_s22 = ssub.s32 %s1196_s15, %s1712_s19 }
   0xf   : > { %p102_p7 = scmp.eq.s32.totalorder %s101_s22, 0  ;;  %s104_s23 = sadd.s32 1, %s1180_s11 }
  0x10   : > { %p114_p8 = scmp.ne.s32.totalorder %s1180_s11, %s1176_s10  ;;  %p115_p9 = scmp.eq.s32.totalorder %s823_s17, 1 }
  0x11   : > { %s1284_s24 = scalar_select %p102_p7, %s1180_s11, %s104_s23  }
  0x12   : > { %p120_p10 = scmp.ne.s32.totalorder %s1176_s10, %s1172_s9  ;;  %p121_p11 = scmp.eq.s32.totalorder %s824_s18, 1 }
  0x13   : > { %p1290_p12 = por %p115_p9, %p114_p8  ;;  %p826_p0 = scmp.ge.s32.totalorder %s1200_s16, 2 }
  0x14   : > { %p1294_p13 = por %p121_p11, %p120_p10 }
  0x15   : > { %137 = sbr.rel (%p826_p0) target bundleno = 70 (0x46), region = 16 }
  0x1a   : > { %140 = sbr.rel (!%p1272_p4) target bundleno = 48 (0x30), region = 20 }
  0x1f   : > { %154 = vsyncadd [#allocation3], 256  ;;  %s1202_s27 = smov [#allocation2]   ;;  %s159_s3 = sshll.u32 %s1698_s0, 4  ;;  %s160_s3 = int_to_ptr.hbm [resolvable:$true] %s159_s3 }
  0x20   : > { %s161_s28 = sshll.u32 %s1202_s27, 4  ;;  %s1011_s4 = sshra.s32 %s160_s3, 4  ;;  %s162_s28 = int_to_ptr.vmem [resolvable:$true] %s161_s28  ;;  %s1012_s4 = int_to_ptr.hbm [resolvable:$true] %s1011_s4 }
  0x21   : > { %s1018_s5 = scalar_lea.hbm %s1012_s4, 16  ;;  %s1022_s8 = scalar_lea.hbm %s1698_s0, 16 }
  0x22   : > { %p1019_p1 = scmp.ne.s32.totalorder %s1012_s4, %s1018_s5  ;;  %p1024_p2 = scmp.lt.s32.totalorder %s1022_s8, %s1018_s5 }
  0x24   : > { %p1026_p3 = pnand %p1024_p2, %p1019_p1 }
  0x26   : > { %1029 = shalt.err (!%p1026_p3)
}
  0x27   : > { %s1030_s12 = sshra.s32 %s162_s28, 4  ;;  %s1041_s18 = scalar_lea.vmem %s1202_s27, 64  ;;  %s1031_s12 = int_to_ptr.vmem [resolvable:$true] %s1030_s12 }
  0x28   : > { %s1037_s17 = scalar_lea.vmem %s1031_s12, 16 }
  0x29   : > { %p1038_p5 = scmp.ne.s32.totalorder %s1031_s12, %s1037_s17  ;;  %p1043_p7 = scmp.lt.s32.totalorder %s1041_s18, %s1037_s17 }
  0x2b   : > { %p1045_p8 = pnand %p1043_p7, %p1038_p5 }
  0x2d   : > { %1048 = shalt.err (!%p1045_p8)
}
  0x2e   : > { %s1203_s22 = smov 128   ;;  %s1204_s23 = smov 8  }
  0x2f   : > { %167 = dma.hbm_to_vmem [thread:$0]  %s160_s3, 256, %s162_s28, [#allocation3], %s1203_s22, %s1203_s22, %s1204_s23  }
  0x30 PF: > { %170 = sbr.rel (!%p1272_p4) target bundleno = 70 (0x46), region = 24 }
  0x35   : > { %184 = vsyncadd [#allocation6], 256  ;;  %s1205_s29 = smov [#allocation5]   ;;  %s189_s6 = sshll.u32 %s1699_s1, 4  ;;  %s190_s6 = int_to_ptr.hbm [resolvable:$true] %s189_s6 }
  0x36   : > { %s191_s30 = sshll.u32 %s1205_s29, 4  ;;  %s1050_s27 = sshra.s32 %s190_s6, 4  ;;  %s192_s30 = int_to_ptr.vmem [resolvable:$true] %s191_s30  ;;  %s1051_s27 = int_to_ptr.hbm [resolvable:$true] %s1050_s27 }
  0x37   : > { %s1057_s7 = scalar_lea.hbm %s1051_s27, 16  ;;  %s1061_s28 = scalar_lea.hbm %s1699_s1, 16 }
  0x38   : > { %p1058_p9 = scmp.ne.s32.totalorder %s1051_s27, %s1057_s7  ;;  %p1063_p10 = scmp.lt.s32.totalorder %s1061_s28, %s1057_s7 }
  0x3a   : > { %p1065_p11 = pnand %p1063_p10, %p1058_p9 }
  0x3c   : > { %1068 = shalt.err (!%p1065_p11)
}
  0x3d   : > { %s1069_s20 = sshra.s32 %s192_s30, 4  ;;  %s1080_s17 = scalar_lea.vmem %s1205_s29, 64  ;;  %s1070_s20 = int_to_ptr.vmem [resolvable:$true] %s1069_s20 }
  0x3e   : > { %s1076_s3 = scalar_lea.vmem %s1070_s20, 16 }
  0x3f   : > { %p1077_p4 = scmp.ne.s32.totalorder %s1070_s20, %s1076_s3  ;;  %p1082_p1 = scmp.lt.s32.totalorder %s1080_s17, %s1076_s3 }
  0x41   : > { %p1084_p2 = pnand %p1082_p1, %p1077_p4 }
  0x43   : > { %1087 = shalt.err (!%p1084_p2)
}
  0x44   : > { %s1206_s18 = smov 128   ;;  %s1207_s22 = smov 8  }
  0x45   : > { %197 = dma.hbm_to_vmem [thread:$0]  %s190_s6, 256, %s192_s30, [#allocation6], %s1206_s18, %s1206_s18, %s1207_s22  }
  0x46 PF: > { %p841_p3 = scmp.ge.s32.totalorder %s1200_s16, 1  ;;  %p199_p5 = scmp.lt.s32.totalorder %s1200_s16, 3 }
  0x48   : > { %p200_p7 = pnand %p841_p3, %p199_p5 }
  0x49   : > { %s205_s23 = sand.u32 (!%p200_p7), 1, %s1188_s13  }
  0x4a   : > { %203 = sbr.rel (%p200_p7) target bundleno = 278 (0x116), region = 28  ;;  %s842_s4 = sshll.u32 (!%p200_p7), %s205_s23, 5 }
  0x4b   : > { %s206_s5 = scalar_lea.sflag (!%p200_p7), [#allocation3], %s205_s23  ;;  %s1320_s29 = scalar_lea.vmem (!%p200_p7), [#allocation2], %s842_s4 }
  0x4f   : > { %1154 = dma.done.wait (%p1276_p6), %s206_s5, 512  }
  0x50   : > { %1156 = vsyncadd (%p1276_p6), %s206_s5, 4294966784  ;;  %s216_s30 = scalar_lea.sflag [#allocation6], %s205_s23  ;;  %s1326_s6 = scalar_lea.vmem [#allocation5], %s842_s4 }
  0x51   : > { %1158 = dma.done.wait (%p1276_p6), %s216_s30, 512  }
  0x52   : > { %1160 = vsyncadd (%p1276_p6), %s216_s30, 4294966784  ;;  %s243_s27 = sand.u32 1, %s1176_s10   ;;  %s856_s7 = sshll.u32 %s1192_s14, 12  ;;  %v1208_v0 = vmov 0.0  }
  0x53   : > { %s844_s8 = sshll.u32 %s243_s27, 5  ;;  %s1338_s12 = sadd.s32 4096, %s856_s7 }
  0x54   : > { %s1340_s28 = scalar_lea.vmem [#allocation7], %s844_s8  ;;  %p846_p6 = scmp.gt.s32.totalorder %s1338_s12, 2048 }
  0x55   : > { %263 = vst [vmem:[%s1340_s28] sm:$0xff] %v1208_v0 }
  0x56   : > { %264 = vst [vmem:[%s1340_s28 + $0x8] sm:$0xff] %v1208_v0  ;;  %273 = sbr.rel (%p846_p6) target bundleno = 169 (0xa9), region = 44 }
  0x57   : > { %265 = vst [vmem:[%s1340_s28 + $0x10] sm:$0xff] %v1208_v0 }
  0x58   : > { %266 = vst [vmem:[%s1340_s28 + $0x18] sm:$0xff] %v1208_v0 }
  0x5b   : > { %v1348_v1 = vld [vmem:[%s1320_s29] sm:$0xff]  ;;  %v1351_v2 = vld [vmem:[%s1320_s29 + $0x8] sm:$0xff]  ;;  %v1355_v4 = vld [vmem:[%s1320_s29 + $0x10] sm:$0xff] }
  0x5c   : > { %v282_v3 = vand.u32 2147483647, %v1348_v1  ;;  %v1358_v5 = vld [vmem:[%s1320_s29 + $0x18] sm:$0xff]  ;;  %v283_v6 = vand.u32 2147483647, %v1351_v2  ;;  %vm362_vm0 = vcmp.ge.f32.partialorder %v1348_v1, 0.0 }
  0x5d   : > { %v284_v7 = vand.u32 2147483647, %v1355_v4  ;;  %v285_v9 = vand.u32 2147483647, %v1358_v5  ;;  %vm363_vm1 = vcmp.ge.f32.partialorder %v1351_v2, 0.0  ;;  %vm364_vm2 = vcmp.ge.f32.partialorder %v1355_v4, 0.0 }
  0x5e   : > { %v286_v8 = vsub.f32 0.0, %v282_v3  ;;  %v287_v10 = vsub.f32 0.0, %v283_v6  ;;  %v278_v42 = vld [vmem:[%s1326_s6] sm:$0xff]  ;;  %v1390_v46 = vld [vmem:[%s1326_s6 + $0x8] sm:$0xff]  ;;  %vm365_vm3 = vcmp.ge.f32.partialorder %v1358_v5, 0.0  ;;  %v1403_v59 = vld [vmem:[%s1326_s6 + $0x10] sm:$0xff] }
  0x5f   : > { %v288_v11 = vsub.f32 0.0, %v284_v7  ;;  %v289_v13 = vsub.f32 0.0, %v285_v9  ;;  %v330_v0 = vmax.f32 %v1348_v1, 0.0  ;;  %v334_v3 = vmul.f32 %v278_v42, %v1348_v1 }
  0x60   : > { %v290_v12 = vmul.f32 1.442695, %v286_v8  ;;  %v292_v14 = vmul.f32 1.442695, %v287_v10 }
  0x61   : > { %v294_v15 = vmul.f32 1.442695, %v288_v11  ;;  %v296_v16 = vmul.f32 1.442695, %v289_v13 }
  0x62   : > { %947 = vpow2.f32 %v290_v12 }
  0x63   : > { %949 = vpow2.f32 %v292_v14 }
  0x64   : > { %951 = vpow2.f32 %v294_v15 }
  0x65   : > { %953 = vpow2.f32 %v296_v16  ;;  %v338_v16 = vsub.f32 %v330_v0, %v334_v3 }
  0x68   : > { %v1363_v17 = vpop.eup %947 }
  0x69   : > { %v1365_v18 = vpop.eup %949  ;;  %v298_v19 = vadd.f32 1.0, %v1363_v17  ;;  %v366_v31 = vsel %vm362_vm0, 1.0, %v1363_v17  ;;  %v306_v52 = vmul.f32 0.5, %v1363_v17  ;;  %vm302_vm4 = vcmp.lt.f32.partialorder %v1363_v17, 0.01 }
  0x6a   : > { %v1368_v20 = vpop.eup %951  ;;  %v299_v21 = vadd.f32 1.0, %v1365_v18  ;;  %v367_v34 = vsel %vm363_vm1, 1.0, %v1365_v18  ;;  %v307_v10 = vmul.f32 0.5, %v1365_v18  ;;  %vm303_vm5 = vcmp.lt.f32.partialorder %v1365_v18, 0.01 }
  0x6b   : > { %v1372_v22 = vadd.f32 1.0, %v1368_v20  ;;  %955 = vrcp.f32 %v298_v19  ;;  %v1374_v23 = vpop.eup %953  ;;  %v368_v44 = vsel %vm364_vm2, 1.0, %v1368_v20  ;;  %v310_v58 = vsub.f32 1.0, %v306_v52 }
  0x6c   : > { %957 = vrcp.f32 %v299_v21  ;;  %v1378_v24 = vadd.f32 1.0, %v1374_v23  ;;  %v369_v60 = vsel %vm365_vm3, 1.0, %v1374_v23  ;;  %v308_v1 = vmul.f32 0.5, %v1368_v20 }
  0x6d   : > { %959 = vrcp.f32 %v1372_v22  ;;  %v314_v8 = vmul.f32 %v1363_v17, %v310_v58  ;;  %vm304_vm10 = vcmp.lt.f32.partialorder %v1368_v20, 0.01  ;;  %vm305_vm13 = vcmp.lt.f32.partialorder %v1374_v23, 0.01 }
  0x6e   : > { %961 = vrcp.f32 %v1378_v24 }
  0x6f   : > { %963 = vlog2.f32 %v298_v19 }
  0x71   : > { %v956_v25 = vpop.eup %955 }
  0x72   : > { %v958_v26 = vpop.eup %957  ;;  %v350_v27 = vmul.f32 %v956_v25, %v298_v19  ;;  %v390_v19 = vmul.f32 -0.5, %v278_v42 }
  0x73   : > { %v960_v28 = vpop.eup %959  ;;  %v351_v29 = vmul.f32 %v958_v26, %v299_v21 }
  0x74   : > { %v354_v30 = vsub.f32 2.0, %v350_v27  ;;  %v352_v35 = vmul.f32 %v960_v28, %v1372_v22  ;;  %v962_v38 = vpop.eup %961 }
  0x75   : > { %v355_v32 = vsub.f32 2.0, %v351_v29  ;;  %v353_v48 = vmul.f32 %v962_v38, %v1378_v24  ;;  %v964_v61 = vpop.eup %963 }
  0x76   : > { %v358_v33 = vmul.f32 %v956_v25, %v354_v30  ;;  %v356_v41 = vsub.f32 2.0, %v352_v35  ;;  %v319_v9 = vmul.f32 0.6931472, %v964_v61  ;;  %v1419_v25 = vld [vmem:[%s1326_s6 + $0x18] sm:$0xff]  ;;  %v331_v30 = vmax.f32 %v1351_v2, 0.0 }
  0x77   : > { %v359_v36 = vmul.f32 %v958_v26, %v355_v32  ;;  %v357_v56 = vsub.f32 2.0, %v353_v48  ;;  %v332_v61 = vmax.f32 %v1355_v4, 0.0 }
  0x78   : > { %v370_v37 = vmul.f32 %v366_v31, %v358_v33  ;;  %v360_v47 = vmul.f32 %v960_v28, %v356_v41  ;;  %v326_v26 = vsel %vm302_vm4, %v314_v8, %v319_v9  ;;  %v311_v28 = vsub.f32 1.0, %v307_v10 }
  0x79   : > { %v371_v39 = vmul.f32 %v367_v34, %v359_v36  ;;  %v361_v63 = vmul.f32 %v962_v38, %v357_v56  ;;  %v335_v31 = vmul.f32 %v1390_v46, %v1351_v2  ;;  %v312_v34 = vsub.f32 1.0, %v308_v1 }
  0x7a   : > { %v374_v40 = vmul.f32 2.0, %v370_v37  ;;  %v372_v51 = vmul.f32 %v368_v44, %v360_v47  ;;  %v342_v36 = vadd.f32 %v338_v16, %v326_v26  ;;  %v391_v44 = vmul.f32 -0.5, %v1390_v46 }
  0x7b   : > { %v375_v43 = vmul.f32 2.0, %v371_v39  ;;  %v373_v7 = vmul.f32 %v369_v60, %v361_v63  ;;  %v339_v2 = vsub.f32 %v331_v30, %v335_v31  ;;  %v316_v48 = vmul.f32 %v1368_v20, %v312_v34 }
  0x7c   : > { %v378_v45 = vsub.f32 1.0, %v374_v40  ;;  %v376_v55 = vmul.f32 2.0, %v372_v51  ;;  %v315_v40 = vmul.f32 %v1365_v18, %v311_v28  ;;  %v395_v56 = vadd.f32 0.75, %v391_v44 }
  0x7d   : > { %v379_v49 = vsub.f32 1.0, %v375_v43  ;;  %v377_v13 = vmul.f32 2.0, %v373_v7  ;;  %v309_v9 = vmul.f32 0.5, %v1374_v23  ;;  %v392_v1 = vmul.f32 -0.5, %v1403_v59 }
  0x7e   : > { %v382_v50 = vmul.f32 %v378_v45, %v278_v42  ;;  %v380_v62 = vsub.f32 1.0, %v376_v55  ;;  %v333_v34 = vmax.f32 %v1358_v5, 0.0 }
  0x7f   : > { %v383_v53 = vmul.f32 %v379_v49, %v1390_v46  ;;  %v381_v17 = vsub.f32 1.0, %v377_v13  ;;  %v313_v28 = vsub.f32 1.0, %v309_v9 }
  0x80   : > { %v1395_v54 = vadd.f32 %v382_v50, %v370_v37  ;;  %v384_v6 = vmul.f32 %v380_v62, %v1403_v59  ;;  %v394_v37 = vadd.f32 0.75, %v390_v19  ;;  %v336_v62 = vmul.f32 %v1403_v59, %v1355_v4 }
  0x81   : > { %v1398_v57 = vadd.f32 %v383_v53, %v371_v39  ;;  %v385_v35 = vmul.f32 %v381_v17, %v1419_v25 }
  0x82   : > { %965 = vrsqrt.f32 %v1395_v54  ;;  %v1412_v12 = vadd.f32 %v384_v6, %v372_v51  ;;  %vm405_vm6 = vcmp.eq.f32.partialorder %v1395_v54, inf  ;;  %vm407_vm7 = vcmp.eq.f32.partialorder %v1395_v54, 0.0 }
  0x83   : > { %967 = vrsqrt.f32 %v1398_v57  ;;  %v1427_v42 = vadd.f32 %v385_v35, %v373_v7  ;;  %vm417_vm8 = vcmp.eq.f32.partialorder %v1398_v57, inf  ;;  %v420_v46 = vand.u32 2147483648, %v1398_v57 }
  0x84   : > { %969 = vlog2.f32 %v299_v21  ;;  %vm419_vm9 = vcmp.eq.f32.partialorder %v1398_v57, 0.0  ;;  %vm429_vm11 = vcmp.eq.f32.partialorder %v1412_v12, inf  ;;  %vm431_vm12 = vcmp.eq.f32.partialorder %v1412_v12, 0.0 }
  0x85   : > { %971 = vrsqrt.f32 %v1412_v12  ;;  %vm441_vm14 = vcmp.eq.f32.partialorder %v1427_v42, inf  ;;  %vm443_vm15 = vcmp.eq.f32.partialorder %v1427_v42, 0.0 }
  0x86   : > { %973 = vlog2.f32 %v1372_v22  ;;  %v408_v22 = vand.u32 2147483648, %v1395_v54 }
  0x87   : > { %975 = vrsqrt.f32 %v1427_v42 }
  0x88   : > { %v966_v11 = vpop.eup %965  ;;  %977 = vlog2.f32 %v1378_v24  ;;  %v462_v24 = vld [vmem:[%s1340_s28] sm:$0xff] }
  0x89   : > { %v968_v14 = vpop.eup %967  ;;  %v399_v15 = vmul.f32 %v966_v11, %v1395_v54 }
  0x8a   : > { %v411_v21 = vmul.f32 %v968_v14, %v1398_v57  ;;  %v970_v29 = vpop.eup %969 }
  0x8b   : > { %v400_v27 = vmul.f32 %v966_v11, %v399_v15  ;;  %v321_v41 = vmul.f32 0.6931472, %v970_v29  ;;  %v972_v43 = vpop.eup %971  ;;  %v340_v15 = vsub.f32 %v332_v61, %v336_v62 }
  0x8c   : > { %v412_v32 = vmul.f32 %v968_v14, %v411_v21  ;;  %v423_v49 = vmul.f32 %v972_v43, %v1412_v12  ;;  %v974_v53 = vpop.eup %973 }
  0x8d   : > { %v401_v33 = vmul.f32 0.5, %v400_v27  ;;  %v327_v55 = vsel %vm303_vm5, %v315_v40, %v321_v41  ;;  %v976_v18 = vpop.eup %975  ;;  %v463_v27 = vld [vmem:[%s1340_s28 + $0x8] sm:$0xff]  ;;  %v317_v40 = vmul.f32 %v1374_v23, %v313_v28 }
  0x8e   : > { %v413_v38 = vmul.f32 0.5, %v412_v32  ;;  %v424_v52 = vmul.f32 %v972_v43, %v423_v49  ;;  %v343_v4 = vadd.f32 %v339_v2, %v327_v55  ;;  %v435_v13 = vmul.f32 %v976_v18, %v1427_v42  ;;  %v978_v17 = vpop.eup %977 }
  0x8f   : > { %v402_v39 = vsub.f32 1.5, %v401_v33  ;;  %v396_v32 = vadd.f32 0.75, %v392_v1  ;;  %v325_v41 = vmul.f32 0.6931472, %v978_v17 }
  0x90   : > { %v414_v45 = vsub.f32 1.5, %v413_v38  ;;  %v425_v63 = vmul.f32 0.5, %v424_v52  ;;  %v436_v21 = vmul.f32 %v976_v18, %v435_v13 }
  0x91   : > { %v403_v47 = vmul.f32 %v966_v11, %v402_v39  ;;  %v323_v11 = vmul.f32 0.6931472, %v974_v53  ;;  %v329_v49 = vsel %vm305_vm13, %v317_v40, %v325_v41  ;;  %v465_v53 = vld [vmem:[%s1340_s28 + $0x18] sm:$0xff] }
  0x92   : > { %v415_v50 = vmul.f32 %v968_v14, %v414_v45  ;;  %v426_v8 = vsub.f32 1.5, %v425_v63  ;;  %v437_v30 = vmul.f32 0.5, %v436_v21  ;;  %v464_v45 = vld [vmem:[%s1340_s28 + $0x10] sm:$0xff] }
  0x93   : > { %v404_v51 = vmul.f32 %v403_v47, %v1395_v54  ;;  %v328_v59 = vsel %vm304_vm10, %v316_v48, %v323_v11 }
  0x94   : > { %v416_v58 = vmul.f32 %v415_v50, %v1398_v57  ;;  %v427_v16 = vmul.f32 %v972_v43, %v426_v8  ;;  %v438_v38 = vsub.f32 1.5, %v437_v30  ;;  %v344_v39 = vadd.f32 %v340_v15, %v328_v59 }
  0x95   : > { %v406_v60 = vsel %vm405_vm6, %v1395_v54, %v404_v51  ;;  %v393_v43 = vmul.f32 -0.5, %v1419_v25 }
  0x96   : > { %v409_v0 = vsel %vm407_vm7, %v408_v22, %v406_v60  ;;  %v418_v3 = vsel %vm417_vm8, %v1398_v57, %v416_v58  ;;  %v439_v2 = vmul.f32 %v976_v18, %v438_v38 }
  0x97   : > { %v446_v6 = vmul.f32 %v409_v0, %v1395_v54  ;;  %v421_v7 = vsel %vm419_vm9, %v420_v46, %v418_v3  ;;  %v432_v54 = vand.u32 2147483648, %v1412_v12  ;;  %v397_v23 = vadd.f32 0.75, %v393_v43 }
  0x98   : > { %v447_v10 = vmul.f32 %v421_v7, %v1398_v57  ;;  %v428_v57 = vmul.f32 %v427_v16, %v1412_v12 }
  0x99   : > { %v450_v14 = vmul.f32 %v446_v6, %v394_v37  ;;  %v337_v37 = vmul.f32 %v1419_v25, %v1358_v5  ;;  %v444_v5 = vand.u32 2147483648, %v1427_v42 }
  0x9a   : > { %v451_v19 = vmul.f32 %v447_v10, %v395_v56  ;;  %v430_v33 = vsel %vm429_vm11, %v1412_v12, %v428_v57 }
  0x9b   : > { %v454_v26 = vmul.f32 %v450_v14, %v342_v36  ;;  %v433_v36 = vsel %vm431_vm12, %v432_v54, %v430_v33  ;;  %v341_v47 = vsub.f32 %v333_v34, %v337_v37 }
  0x9c   : > { %v455_v29 = vmul.f32 %v451_v19, %v343_v4  ;;  %v448_v20 = vmul.f32 %v433_v36, %v1412_v12  ;;  %v440_v12 = vmul.f32 %v439_v2, %v1427_v42 }
  0x9d   : > { %v466_v31 = vadd.f32 %v462_v24, %v454_v26  ;;  %v345_v51 = vadd.f32 %v341_v47, %v329_v49 }
  0x9e   : > { %v467_v35 = vadd.f32 %v463_v27, %v455_v29  ;;  %v452_v44 = vmul.f32 %v448_v20, %v396_v32  ;;  %v442_v25 = vsel %vm441_vm14, %v1427_v42, %v440_v12 }
  0x9f   : > { %470 = vst [vmem:[%s1340_s28] sm:$0xff] %v466_v31  ;;  %v445_v50 = vsel %vm443_vm15, %v444_v5, %v442_v25 }
  0xa0   : > { %471 = vst [vmem:[%s1340_s28 + $0x8] sm:$0xff] %v467_v35  ;;  %v456_v48 = vmul.f32 %v452_v44, %v344_v39  ;;  %v449_v46 = vmul.f32 %v445_v50, %v1427_v42 }
  0xa2   : > { %v468_v22 = vadd.f32 %v464_v45, %v456_v48  ;;  %v453_v52 = vmul.f32 %v449_v46, %v397_v23 }
  0xa4   : > { %472 = vst [vmem:[%s1340_s28 + $0x10] sm:$0xff] %v468_v22  ;;  %v457_v55 = vmul.f32 %v453_v52, %v345_v51 }
  0xa6   : > { %v469_v56 = vadd.f32 %v465_v53, %v457_v55 }
  0xa8   : > { %473 = vst [vmem:[%s1340_s28 + $0x18] sm:$0xff] %v469_v56 }
  0xa9 PF: > { %p847_p8 = scmp.le.s32.totalorder %s1338_s12, 2048 }
  0xaa   : > { %s677_s21 = ssub.s32 (!%p847_p8), 2048, %s856_s7 }
  0xab   : > { %476 = sbr.rel (%p847_p8) target bundleno = 262 (0x106), region = 48 }
  0xb0   : > { %v1488_v58 = vld [vmem:[%s1320_s29] sm:$0xff]  ;;  %v1491_v60 = vld [vmem:[%s1320_s29 + $0x8] sm:$0xff]  ;;  %v1495_v61 = vld [vmem:[%s1320_s29 + $0x10] sm:$0xff]  ;;  %v477_v5 = vlaneseq }
  0xb1   : > { %v501_v42 = vand.u32 2147483647, %v1488_v58  ;;  %v502_v62 = vand.u32 2147483647, %v1491_v60  ;;  %v503_v0 = vand.u32 2147483647, %v1495_v61 }
  0xb2   : > { %v1500_v8 = vld [vmem:[%s1320_s29 + $0x18] sm:$0xff]  ;;  %vm581_vm0 = vcmp.ge.f32.partialorder %v1488_v58, 0.0  ;;  %vm582_vm1 = vcmp.ge.f32.partialorder %v1491_v60, 0.0  ;;  %v497_v37 = vld [vmem:[%s1326_s6] sm:$0xff]  ;;  %vm583_vm2 = vcmp.ge.f32.partialorder %v1495_v61, 0.0  ;;  %v1528_v20 = vld [vmem:[%s1326_s6 + $0x8] sm:$0xff] }
  0xb3   : > { %v505_v63 = vsub.f32 0.0, %v501_v42  ;;  %v506_v3 = vsub.f32 0.0, %v502_v62  ;;  %v507_v6 = vsub.f32 0.0, %v503_v0  ;;  %v504_v4 = vand.u32 2147483647, %v1500_v8  ;;  %v1549_v42 = vld [vmem:[%s1326_s6 + $0x10] sm:$0xff] }
  0xb4   : > { %v1539_v50 = vshrl.u32 %v477_v5, 7  ;;  %v549_v51 = vmax.f32 %v1488_v58, 0.0  ;;  %v1543_v46 = vand.u32 127, %v477_v5  ;;  %v553_v52 = vmul.f32 %v497_v37, %v1488_v58 }
  0xb5   : > { %v509_v18 = vmul.f32 1.442695, %v505_v63  ;;  %v511_v7 = vmul.f32 1.442695, %v506_v3  ;;  %v513_v9 = vmul.f32 1.442695, %v507_v6 }
  0xb6   : > { %v508_v11 = vsub.f32 0.0, %v504_v4  ;;  %v484_v55 = vmul.u32 128, %v1539_v50  ;;  %vm584_vm3 = vcmp.ge.f32.partialorder %v1500_v8, 0.0  ;;  %v557_v6 = vsub.f32 %v549_v51, %v553_v52 }
  0xb7   : > { %979 = vpow2.f32 %v509_v18  ;;  %v610_v5 = vmul.f32 -0.5, %v1528_v20 }
  0xb8   : > { %981 = vpow2.f32 %v511_v7  ;;  %v515_v16 = vmul.f32 1.442695, %v508_v11  ;;  %v1558_v11 = vadd.s32 %v484_v55, %v1543_v46 }
  0xb9   : > { %983 = vpow2.f32 %v513_v9 }
  0xbd   : > { %v1503_v10 = vpop.eup %979 }
  0xbe   : > { %v1505_v13 = vpop.eup %981  ;;  %v517_v14 = vadd.f32 1.0, %v1503_v10  ;;  %v585_v28 = vsel %vm581_vm0, 1.0, %v1503_v10  ;;  %v525_v43 = vmul.f32 0.5, %v1503_v10  ;;  %vm521_vm4 = vcmp.lt.f32.partialorder %v1503_v10, 0.01 }
  0xbf   : > { %v1508_v15 = vpop.eup %983  ;;  %v518_v1 = vadd.f32 1.0, %v1505_v13  ;;  %v586_v30 = vsel %vm582_vm1, 1.0, %v1505_v13  ;;  %v526_v56 = vmul.f32 0.5, %v1505_v13  ;;  %vm522_vm5 = vcmp.lt.f32.partialorder %v1505_v13, 0.01 }
  0xc0   : > { %985 = vrcp.f32 %v517_v14  ;;  %v1512_v24 = vadd.f32 1.0, %v1508_v15  ;;  %v587_v44 = vsel %vm583_vm2, 1.0, %v1508_v15  ;;  %v529_v25 = vsub.f32 1.0, %v525_v43 }
  0xc1   : > { %987 = vrcp.f32 %v518_v1  ;;  %vm523_vm10 = vcmp.lt.f32.partialorder %v1508_v15, 0.01 }
  0xc2   : > { %989 = vpow2.f32 %v515_v16  ;;  %v533_v63 = vmul.f32 %v1503_v10, %v529_v25 }
  0xc3   : > { %991 = vrcp.f32 %v1512_v24 }
  0xc6   : > { %v986_v19 = vpop.eup %985 }
  0xc7   : > { %v988_v54 = vpop.eup %987  ;;  %v569_v21 = vmul.f32 %v986_v19, %v517_v14 }
  0xc8   : > { %v570_v26 = vmul.f32 %v988_v54, %v518_v1  ;;  %v1517_v57 = vpop.eup %989 }
  0xc9   : > { %v573_v27 = vsub.f32 2.0, %v569_v21  ;;  %v992_v29 = vpop.eup %991  ;;  %v1522_v33 = vadd.f32 1.0, %v1517_v57  ;;  %v588_v9 = vsel %vm584_vm3, 1.0, %v1517_v57  ;;  %v609_v21 = vmul.f32 -0.5, %v497_v37 }
  0xca   : > { %v574_v17 = vsub.f32 2.0, %v570_v26  ;;  %v571_v35 = vmul.f32 %v992_v29, %v1512_v24  ;;  %vm524_vm0 = vcmp.lt.f32.partialorder %v1517_v57, 0.01 }
  0xcb   : > { %v577_v59 = vmul.f32 %v986_v19, %v573_v27  ;;  %993 = vrcp.f32 %v1522_v33 }
  0xcc   : > { %v578_v31 = vmul.f32 %v988_v54, %v574_v17  ;;  %995 = vlog2.f32 %v517_v14  ;;  %v575_v41 = vsub.f32 2.0, %v571_v35  ;;  %v527_v17 = vmul.f32 0.5, %v1508_v15 }
  0xcd   : > { %v589_v32 = vmul.f32 %v585_v28, %v577_v59  ;;  %v550_v28 = vmax.f32 %v1491_v60, 0.0  ;;  %v479_v59 = vadd.s32 8, %v1539_v50 }
  0xce   : > { %v590_v34 = vmul.f32 %v586_v30, %v578_v31  ;;  %v579_v47 = vmul.f32 %v992_v29, %v575_v41  ;;  %v554_v30 = vmul.f32 %v1528_v20, %v1491_v60  ;;  %v531_v43 = vsub.f32 1.0, %v527_v17 }
  0xcf   : > { %v593_v36 = vmul.f32 2.0, %v589_v32 }
  0xd0   : > { %v594_v38 = vmul.f32 2.0, %v590_v34  ;;  %v591_v49 = vmul.f32 %v587_v44, %v579_v47  ;;  %v558_v44 = vsub.f32 %v550_v28, %v554_v30 }
  0xd1   : > { %v597_v39 = vsub.f32 1.0, %v593_v36  ;;  %v994_v23 = vpop.eup %993 }
  0xd2   : > { %v598_v40 = vsub.f32 1.0, %v594_v38  ;;  %v996_v22 = vpop.eup %995  ;;  %v595_v53 = vmul.f32 2.0, %v591_v49  ;;  %v572_v62 = vmul.f32 %v994_v23, %v1522_v33 }
  0xd3   : > { %v601_v2 = vmul.f32 %v597_v39, %v497_v37  ;;  %v538_v0 = vmul.f32 0.6931472, %v996_v22  ;;  %v613_v37 = vadd.f32 0.75, %v609_v21  ;;  %v1574_v39 = vld [vmem:[%s1326_s6 + $0x18] sm:$0xff] }
  0xd4   : > { %v602_v45 = vmul.f32 %v598_v40, %v1528_v20  ;;  %v599_v3 = vsub.f32 1.0, %v595_v53  ;;  %v576_v18 = vsub.f32 2.0, %v572_v62  ;;  %v480_v62 = vadd.s32 16, %v1539_v50 }
  0xd5   : > { %v1534_v12 = vadd.f32 %v601_v2, %v589_v32  ;;  %v545_v54 = vsel %vm521_vm4, %v533_v63, %v538_v0  ;;  %v485_v2 = vmul.u32 128, %v479_v59  ;;  %v614_v0 = vadd.f32 0.75, %v610_v5 }
  0xd6   : > { %v1536_v48 = vadd.f32 %v602_v45, %v590_v34  ;;  %v603_v7 = vmul.f32 %v599_v3, %v1549_v42  ;;  %v580_v16 = vmul.f32 %v994_v23, %v576_v18  ;;  %v561_v40 = vadd.f32 %v557_v6, %v545_v54 }
  0xd7   : > { %997 = vrsqrt.f32 %v1534_v12  ;;  %vm624_vm6 = vcmp.eq.f32.partialorder %v1534_v12, inf  ;;  %vm626_vm7 = vcmp.eq.f32.partialorder %v1534_v12, 0.0  ;;  %v611_v59 = vmul.f32 -0.5, %v1549_v42 }
  0xd8   : > { %999 = vrsqrt.f32 %v1536_v48  ;;  %v1562_v26 = vadd.f32 %v603_v7, %v591_v49  ;;  %v592_v29 = vmul.f32 %v588_v9, %v580_v16  ;;  %vm636_vm8 = vcmp.eq.f32.partialorder %v1536_v48, inf }
  0xd9   : > { %1001 = vlog2.f32 %v518_v1  ;;  %v530_v1 = vsub.f32 1.0, %v526_v56  ;;  %v639_v20 = vand.u32 2147483648, %v1536_v48  ;;  %vm638_vm9 = vcmp.eq.f32.partialorder %v1536_v48, 0.0 }
  0xda   : > { %1003 = vrsqrt.f32 %v1562_v26  ;;  %v596_v36 = vmul.f32 2.0, %v592_v29  ;;  %v1604_v9 = vstv %s677_s21  ;;  %v486_v16 = vmul.u32 128, %v480_v62 }
  0xdb   : > { %v534_v34 = vmul.f32 %v1505_v13, %v530_v1  ;;  %1005 = vlog2.f32 %v1512_v24  ;;  %v627_v24 = vand.u32 2147483648, %v1534_v12  ;;  %vm679_vm11 = vcmp.lt.s32.totalorder %v1558_v11, %v1604_v9 }
  0xdc   : > { %v600_v60 = vsub.f32 1.0, %v596_v36  ;;  %vm648_vm13 = vcmp.eq.f32.partialorder %v1562_v26, inf  ;;  %vm650_vm14 = vcmp.eq.f32.partialorder %v1562_v26, 0.0  ;;  %v490_v5 = vadd.s32 %v486_v16, %v1543_v46  ;;  %v694_v16 = vld [vmem:[%s1340_s28 + $0x18] sm:$0xff] }
  0xdd   : > { %v998_v58 = vpop.eup %997 }
  0xde   : > { %v1000_v4 = vpop.eup %999  ;;  %v618_v14 = vmul.f32 %v998_v58, %v1534_v12  ;;  %v604_v13 = vmul.f32 %v600_v60, %v1574_v39  ;;  %vm681_vm15 = vcmp.lt.s32.totalorder %v490_v5, %v1604_v9 }
  0xdf   : > { %v1002_v19 = vpop.eup %1001  ;;  %v630_v10 = vmul.f32 %v1000_v4, %v1536_v48 }
  0xe0   : > { %v619_v27 = vmul.f32 %v998_v58, %v618_v14  ;;  %v540_v35 = vmul.f32 0.6931472, %v1002_v19  ;;  %v1004_v23 = vpop.eup %1003  ;;  %v1585_v52 = vadd.f32 %v604_v13, %v592_v29  ;;  %v535_v19 = vmul.f32 %v1508_v15, %v531_v43  ;;  %v691_v29 = vld [vmem:[%s1340_s28] sm:$0xff] }
  0xe1   : > { %v631_v31 = vmul.f32 %v1000_v4, %v630_v10  ;;  %v642_v51 = vmul.f32 %v1004_v23, %v1562_v26  ;;  %v1006_v53 = vpop.eup %1005  ;;  %v551_v10 = vmax.f32 %v1495_v61, 0.0  ;;  %v615_v43 = vadd.f32 0.75, %v611_v59 }
  0xe2   : > { %v620_v32 = vmul.f32 0.5, %v619_v27  ;;  %v546_v49 = vsel %vm522_vm5, %v534_v34, %v540_v35  ;;  %1007 = vrsqrt.f32 %v1585_v52  ;;  %v542_v54 = vmul.f32 0.6931472, %v1006_v53  ;;  %v692_v34 = vld [vmem:[%s1340_s28 + $0x8] sm:$0xff] }
  0xe3   : > { %v632_v38 = vmul.f32 0.5, %v631_v31  ;;  %v562_v55 = vadd.f32 %v558_v44, %v546_v49  ;;  %v643_v3 = vmul.f32 %v1004_v23, %v642_v51  ;;  %v555_v27 = vmul.f32 %v1549_v42, %v1495_v61 }
  0xe4   : > { %v621_v41 = vsub.f32 1.5, %v620_v32  ;;  %1009 = vlog2.f32 %v1522_v33  ;;  %v528_v31 = vmul.f32 0.5, %v1517_v57  ;;  %v651_v61 = vand.u32 2147483648, %v1562_v26 }
  0xe5   : > { %v633_v45 = vsub.f32 1.5, %v632_v38  ;;  %v644_v14 = vmul.f32 0.5, %v643_v3  ;;  %v559_v36 = vsub.f32 %v551_v10, %v555_v27  ;;  %v547_v38 = vsel %vm523_vm10, %v535_v19, %v542_v54 }
  0xe6   : > { %v622_v47 = vmul.f32 %v998_v58, %v621_v41  ;;  %v489_v58 = vadd.s32 %v485_v2, %v1543_v46  ;;  %v532_v2 = vsub.f32 1.0, %v528_v31  ;;  %v481_v15 = vadd.s32 24, %v1539_v50  ;;  %v693_v50 = vld [vmem:[%s1340_s28 + $0x10] sm:$0xff] }
  0xe7   : > { %v634_v25 = vmul.f32 %v1000_v4, %v633_v45  ;;  %v645_v28 = vsub.f32 1.5, %v644_v14  ;;  %v563_v49 = vadd.f32 %v559_v36, %v547_v38  ;;  %v612_v53 = vmul.f32 -0.5, %v1574_v39 }
  0xe8   : > { %v623_v22 = vmul.f32 %v622_v47, %v1534_v12  ;;  %vm680_vm12 = vcmp.lt.s32.totalorder %v489_v58, %v1604_v9  ;;  %vm660_vm1 = vcmp.eq.f32.partialorder %v1585_v52, inf  ;;  %vm662_vm2 = vcmp.eq.f32.partialorder %v1585_v52, 0.0 }
  0xe9   : > { %v635_v56 = vmul.f32 %v634_v25, %v1536_v48  ;;  %v646_v30 = vmul.f32 %v1004_v23, %v645_v28  ;;  %v552_v23 = vmax.f32 %v1500_v8, 0.0 }
  0xea   : > { %v625_v63 = vsel %vm624_vm6, %v1534_v12, %v623_v22 }
  0xeb   : > { %v628_v18 = vsel %vm626_vm7, %v627_v24, %v625_v63  ;;  %v637_v6 = vsel %vm636_vm8, %v1536_v48, %v635_v56  ;;  %v647_v33 = vmul.f32 %v646_v30, %v1562_v26  ;;  %v556_v24 = vmul.f32 %v1574_v39, %v1500_v8 }
  0xec   : > { %v665_v7 = vmul.f32 %v628_v18, %v1534_v12  ;;  %v640_v4 = vsel %vm638_vm9, %v639_v20, %v637_v6  ;;  %v536_v20 = vmul.f32 %v1517_v57, %v532_v2  ;;  %v487_v56 = vmul.u32 128, %v481_v15 }
  0xed   : > { %v666_v1 = vmul.f32 %v640_v4, %v1536_v48  ;;  %v1008_v48 = vpop.eup %1007  ;;  %v649_v60 = vsel %vm648_vm13, %v1562_v26, %v647_v33  ;;  %v663_v8 = vand.u32 2147483648, %v1585_v52  ;;  %v560_v62 = vsub.f32 %v552_v23, %v556_v24 }
  0xee   : > { %v669_v21 = vmul.f32 %v665_v7, %v613_v37  ;;  %v654_v11 = vmul.f32 %v1008_v48, %v1585_v52  ;;  %v1010_v44 = vpop.eup %1009  ;;  %v652_v45 = vsel %vm650_vm14, %v651_v61, %v649_v60  ;;  %v616_v39 = vadd.f32 0.75, %v612_v53 }
  0xef   : > { %v670_v12 = vmul.f32 %v666_v1, %v614_v0  ;;  %v667_v13 = vmul.f32 %v652_v45, %v1562_v26  ;;  %v544_v51 = vmul.f32 0.6931472, %v1010_v44  ;;  %v491_v58 = vadd.s32 %v487_v56, %v1543_v46 }
  0xf0   : > { %v673_v17 = vmul.f32 %v669_v21, %v561_v40  ;;  %v655_v40 = vmul.f32 %v1008_v48, %v654_v11 }
  0xf1   : > { %v674_v32 = vmul.f32 %v670_v12, %v562_v55  ;;  %v671_v22 = vmul.f32 %v667_v13, %v615_v43  ;;  %v548_v57 = vsel %vm524_vm0, %v536_v20, %v544_v51  ;;  %vm682_vm3 = vcmp.lt.s32.totalorder %v491_v58, %v1604_v9 }
  0xf2   : > { %v683_v35 = vsel %vm679_vm11, %v673_v17, 0.0  ;;  %v656_v47 = vmul.f32 0.5, %v655_v40  ;;  %v564_v7 = vadd.f32 %v560_v62, %v548_v57 }
  0xf3   : > { %v695_v42 = vadd.f32 %v691_v29, %v683_v35  ;;  %v684_v37 = vsel %vm680_vm12, %v674_v32, 0.0  ;;  %v675_v26 = vmul.f32 %v671_v22, %v563_v49 }
  0xf4   : > { %v696_v41 = vadd.f32 %v692_v34, %v684_v37  ;;  %v657_v25 = vsub.f32 1.5, %v656_v47 }
  0xf5   : > { %699 = vst [vmem:[%s1340_s28] sm:$0xff] %v695_v42  ;;  %v685_v0 = vsel %vm681_vm15, %v675_v26, 0.0 }
  0xf6   : > { %700 = vst [vmem:[%s1340_s28 + $0x8] sm:$0xff] %v696_v41  ;;  %v658_v55 = vmul.f32 %v1008_v48, %v657_v25  ;;  %v697_v3 = vadd.f32 %v693_v50, %v685_v0 }
  0xf8   : > { %v659_v63 = vmul.f32 %v658_v55, %v1585_v52  ;;  %701 = vst [vmem:[%s1340_s28 + $0x10] sm:$0xff] %v697_v3 }
  0xfa   : > { %v661_v18 = vsel %vm660_vm1, %v1585_v52, %v659_v63 }
  0xfb   : > { %v664_v6 = vsel %vm662_vm2, %v663_v8, %v661_v18 }
  0xfc   : > { %v668_v4 = vmul.f32 %v664_v6, %v1585_v52 }
  0xfe   : > { %v672_v14 = vmul.f32 %v668_v4, %v616_v39 }
 0x100   : > { %v676_v1 = vmul.f32 %v672_v14, %v564_v7 }
 0x102   : > { %v686_v19 = vsel %vm682_vm3, %v676_v1, 0.0 }
 0x103   : > { %v698_v54 = vadd.f32 %v694_v16, %v686_v19 }
 0x105   : > { %702 = vst [vmem:[%s1340_s28 + $0x18] sm:$0xff] %v698_v54 }
 0x106 PF: > { %s858_s20 = sshll.u32 %s1192_s14, 5  ;;  %s716_s22 = sshll.u32 %s1340_s28, 4  ;;  %s717_s22 = int_to_ptr.vmem [resolvable:$true] %s716_s22 }
 0x107   : > { %s715_s18 = scalar_lea.hbm %s1700_s2, %s858_s20  ;;  %s704_s4 = scalar_lea.sflag [#allocation4], %s243_s27 }
 0x108   : > { %s718_s23 = sshll.u32 %s715_s18, 4  ;;  %s1109_s14 = scalar_lea.hbm %s1700_s2, 64  ;;  %s719_s23 = int_to_ptr.hbm [resolvable:$true] %s718_s23 }
 0x109   : > { %s1103_s5 = sshra.s32 %s719_s23, 4  ;;  %s1104_s5 = int_to_ptr.hbm [resolvable:$true] %s1103_s5 }
 0x10a   : > { %s1105_s29 = scalar_lea.hbm %s1104_s5, 32  ;;  %p1110_p4 = scmp.lt.s32.totalorder %s1104_s5, %s1700_s2 }
 0x10b   : > { %p1106_p9 = scmp.ne.s32.totalorder %s1104_s5, %s1105_s29  ;;  %p1111_p1 = scmp.lt.s32.totalorder %s1109_s14, %s1105_s29 }
 0x10d   : > { %p1107_p10 = pnand %p1106_p9, %p1290_p12  ;;  %p1112_p2 = por %p1111_p1, %p1110_p4 }
 0x10f   : > { %p1108_p11 = pneg %p1107_p10 }
 0x111   : > { %p1113_p3 = pnand %p1112_p2, %p1108_p11 }
 0x113   : > { %1116 = shalt.err (!%p1113_p3)
}
 0x114   : > { %s1209_s27 = smov 128   ;;  %s1210_s12 = smov 8  }
 0x115   : > { %861 = dma.vmem_to_hbm [thread:$0]  (%p1290_p12), %s717_s22, 512, %s719_s23, %s704_s4, %s1209_s27, %s1209_s27, %s1210_s12  }
 0x116 PF: > { %s733_s28 = sand.u32 1, %s1172_s9   ;;  %p864_p5 = pnand %p826_p0, %p1294_p13 }
 0x117   : > { %s734_s21 = scalar_lea.sflag [#allocation4], %s733_s28 }
 0x118   : > { %p865_p7 = pneg %p864_p5 }
 0x11a   : > { %1162 = dma.done.wait (%p865_p7), %s734_s21, 512  }
 0x11b   : > { %1164 = vsyncadd (%p865_p7), %s734_s21, 4294966784  ;;  %s21_s16 = sadd.s32 1, %s1200_s16   ;;  %s1705_s9 = smov %s1176_s10 }
 0x11c   : > { %p18_p6 = scmp.ge.s32.totalorder %s21_s16, 4   ;;  %s1706_s10 = smov %s1180_s11 }
 0x11d   : > { %s1707_s11 = smov %s1284_s24  ;;  %s1708_s12 = smov %s1188_s13 }
 0x11e   : > { %s1688_s13 = smov 0   ;;  %s1709_s14 = smov %s1196_s15 }
 0x11f   : > { %s1710_s15 = smov %s1712_s19  ;;  %20 = sbr.rel (!%p18_p6) target bundleno = 9 (0x9), region = 98 }
 0x124   :  { %740 = vsyncpa [#allocation3], 1 }
 0x125   :  { %742 = vsyncpa [#allocation3 + $0x1], 1 }
 0x126   :  { %743 = vsyncpa [#allocation6], 1 }
 0x127   :  { %745 = vsyncpa [#allocation6 + $0x1], 1 }
 0x128   :  { %746 = vsyncpa [#allocation4], 1 }
 0x129   :  { %748 = vsyncpa [#allocation4 + $0x1], 1 }

</bundles_post_ra>
